<compile_context>
chip_gen: v5e
topology: v5e:2x2
jax: 0.10.0
libtpu: 0.0.40
codegen_flags: <defaults>
</compile_context>

<pallas_src>
import functools
import math

import jax
import jax.numpy as jnp
from jax.experimental import pallas as pl
from jax.experimental.pallas import tpu as pltpu


def _build_pe_table(d_model: int, max_len: int = 5000) -> jnp.ndarray:
    """PyTorch-identical positional-encoding buffer, shape (max_len, 1, d_model), f32."""
    position = jnp.arange(0, max_len, dtype=jnp.float32)[:, None]             # (max_len, 1)
    div_term = jnp.exp(
        jnp.arange(0, d_model, 2, dtype=jnp.float32) * (-math.log(10000.0) / d_model)
    )                                                                          # (d_model/2,)
    angles = position * div_term                                               # (max_len, d_model/2)
    pe = jnp.zeros((max_len, d_model), dtype=jnp.float32)
    pe = pe.at[:, 0::2].set(jnp.sin(angles))
    pe = pe.at[:, 1::2].set(jnp.cos(angles))
    return pe[:, None, :]                                                      # (max_len, 1, d_model)


def prepare_pe_2d(pe_table: jnp.ndarray, dtype) -> jnp.ndarray:
    """One-time (cacheable) prep: (max_len, 1, D) f32 buffer -> (max_len, D) in `dtype`."""
    return pe_table[:, 0, :].astype(dtype)


def _pos_enc_kernel(x_ref, pe_ref, o_ref, *, batch: int, d_model: int):
    # x_ref/o_ref: (ts, B*D) lane-dense tiles; pe_ref: (ts, D).
    pe = pe_ref[...]
    if batch == 1:
        o_ref[...] = x_ref[...] + pe
    else:
        # Per-batch lane-group add with static offsets: no (ts, B*D) pe
        # temporary is materialized, so vector traffic stays 1x load + 1x store.
        for b in range(batch):
            sl = pl.ds(b * d_model, d_model)
            o_ref[:, sl] = x_ref[:, sl] + pe


def _round_up(x: int, m: int) -> int:
    return -(-x // m) * m


def positional_encoding(x: jnp.ndarray, pe2d: jnp.ndarray) -> jnp.ndarray:
    """x: (S, B, D); pe2d: (max_len, D) pre-cast table. Returns x + pe2d[:S, None, :]."""
    S, B, D = x.shape
    assert pe2d.shape[0] >= S and pe2d.shape[1] == D
    assert pe2d.dtype == x.dtype, "cache the PE table in the activation dtype"

    # Free (contiguous) reshape into a lane-dense 2-D view.
    x2 = x.reshape(S, B * D)                                  # sublane = S, lane = B*D

    itemsize = jnp.dtype(x.dtype).itemsize
    # Sublane packing granularity: f32 -> 8 rows, bf16 -> 16, int8/fp8 -> 32.
    row_align = {4: 8, 2: 16, 1: 32}.get(itemsize, 8)
    row_bytes = max(B * D * itemsize, 1)

    # Per-tile VMEM footprint ~ 2x(in) + 2x(out) + 2x(pe) double buffers.
    footprint_factor = 4.0 + 2.0 / B
    vmem_budget = 12 * 1024 * 1024      # stays under v5e's 16 MiB scoped default
    ts_vmem = int(vmem_budget / footprint_factor) // row_bytes
    ts_vmem = max(row_align, (ts_vmem // row_align) * row_align)

    # At least 4 grid steps when S is big enough (v7x: 2 TCs x >=2 blocks each;
    # single-TC chips: DMA/compute/writeback overlap), otherwise one big block.
    if S >= 4 * row_align:
        min_steps = 4
    elif S >= 2 * row_align:
        min_steps = 2
    else:
        min_steps = 1
    ts_steps = _round_up(pl.cdiv(S, min_steps), row_align)

    ts = min(ts_vmem, ts_steps)
    if ts >= S:
        ts = S                                                # full-extent block is always legal
    grid = (pl.cdiv(S, ts),)

    bytes_accessed = 2 * S * B * D * itemsize + S * D * itemsize   # read x + write out + read pe
    cost = pl.CostEstimate(flops=S * B * D, transcendentals=0,
                           bytes_accessed=bytes_accessed)

    kernel = functools.partial(_pos_enc_kernel, batch=B, d_model=D)

    out2 = pl.pallas_call(
        kernel,
        out_shape=jax.ShapeDtypeStruct((S, B * D), x.dtype),
        grid_spec=pl.GridSpec(
            grid=grid,
            in_specs=[
                pl.BlockSpec((ts, B * D), lambda i: (i, 0)),   # x tile
                pl.BlockSpec((ts, D), lambda i: (i, 0)),       # pe tile (full table passed, only [:S] blocks read)
            ],
            out_specs=pl.BlockSpec((ts, B * D), lambda i: (i, 0)),
        ),
        compiler_params=pltpu.CompilerParams(
            dimension_semantics=("parallel",),
        ),
        cost_estimate=cost,
    )(x2, pe2d)

    return out2.reshape(S, B, D)


if __name__ == "__main__":
    seq_len, batch, d_model = 8, 2, 32
    max_len = 64  # small synthetic buffer (module default is 5000)

    key = jax.random.PRNGKey(0)
    x = jax.random.normal(key, (seq_len, batch, d_model), dtype=jnp.float32)

    pe_table = _build_pe_table(d_model, max_len=max_len)      # (max_len, 1, D), f32
    pe2d = prepare_pe_2d(pe_table, x.dtype)                   # cached (max_len, D) activation-dtype view

    # Reference (plain JAX, same semantics as the PyTorch forward).
    ref = x + pe_table[:seq_len]

    out = positional_encoding(x, pe2d)
    out = jax.block_until_ready(out)

    assert out.shape == (seq_len, batch, d_model)
    assert jnp.allclose(out, ref, atol=1e-6, rtol=1e-6)

    print("KERNEL_OK")
</pallas_src>

<mosaic_0001>
module attributes {stable_mosaic.version = 11 : i64} {
  func.func @_pos_enc_kernel(%arg0: i32, %arg1: memref<8x64xf32, #tpu.memory_space<vmem>>, %arg2: memref<8x32xf32, #tpu.memory_space<vmem>>, %arg3: memref<8x64xf32, #tpu.memory_space<vmem>>) attributes {dimension_semantics = [#tpu.dimension_semantics<parallel>], iteration_bounds = array<i64: 1>, scalar_prefetch = 0 : i64, scratch_operands = 0 : i64, tpu.core_type = #tpu.core_type<tc>, window_params = [{transform_indices = @transform_0, window_bounds = array<i64: 8, 64>}, {transform_indices = @transform_1, window_bounds = array<i64: 8, 32>}, {transform_indices = @transform_2, window_bounds = array<i64: 8, 64>}]} {
    %c0 = arith.constant 0 : index
    %c0_0 = arith.constant 0 : index
    %0 = vector.load %arg2[%c0, %c0_0] : memref<8x32xf32, #tpu.memory_space<vmem>>, vector<8x32xf32>
    %c0_1 = arith.constant 0 : index
    %c0_2 = arith.constant 0 : index
    %1 = vector.load %arg1[%c0_1, %c0_2] : memref<8x64xf32, #tpu.memory_space<vmem>>, vector<8x32xf32>
    %2 = arith.addf %1, %0 : vector<8x32xf32>
    %c0_3 = arith.constant 0 : index
    %c0_4 = arith.constant 0 : index
    %3 = vector.load %arg3[%c0_3, %c0_4] : memref<8x64xf32, #tpu.memory_space<vmem>>, vector<8x32xf32>
    tpu.vector_store %arg3[%c0_3, %c0_4], %2 {strides = array<i32>} : memref<8x64xf32, #tpu.memory_space<vmem>>, vector<8x32xf32>,
    %c0_5 = arith.constant 0 : index
    %c32 = arith.constant 32 : index
    %4 = vector.load %arg1[%c0_5, %c32] : memref<8x64xf32, #tpu.memory_space<vmem>>, vector<8x32xf32>
    %5 = arith.addf %4, %0 : vector<8x32xf32>
    %c0_6 = arith.constant 0 : index
    %c32_7 = arith.constant 32 : index
    %6 = vector.load %arg3[%c0_6, %c32_7] : memref<8x64xf32, #tpu.memory_space<vmem>>, vector<8x32xf32>
    tpu.vector_store %arg3[%c0_6, %c32_7], %5 {strides = array<i32>} : memref<8x64xf32, #tpu.memory_space<vmem>>, vector<8x32xf32>,
    return
  }
  func.func @transform_0(%arg0: i32) -> (i32, i32) {
    %c0_i32 = arith.constant 0 : i32
    %c0_i32_0 = arith.constant 0 : i32
    return %arg0, %c0_i32 : i32, i32
  }
  func.func @transform_1(%arg0: i32) -> (i32, i32) {
    %c0_i32 = arith.constant 0 : i32
    %c0_i32_0 = arith.constant 0 : i32
    return %arg0, %c0_i32 : i32, i32
  }
  func.func @transform_2(%arg0: i32) -> (i32, i32) {
    %c0_i32 = arith.constant 0 : i32
    %c0_i32_0 = arith.constant 0 : i32
    return %arg0, %c0_i32 : i32, i32
  }
}

</mosaic_0001>

<bundles_post_ra>
// kernel: tpu_custom_call.1
= control target key start
LH: loop header
LB: loop body
LE: loop exit
PB: predicated region body
PF: predicated region fallthrough
CT: control target
= control target key end

     0   :  { %vm15_vm0 = vcmask 261120   ;;  %s95_s0 = inlined_call_operand.vmem [shape: f32[8,64], index: 0, kind: input, shape index: {}]   ;;  %s96_s1 = inlined_call_operand.vmem [shape: f32[64,32], index: 1, kind: input, shape index: {}]   ;;  %s97_s2 = inlined_call_operand.hbm [shape: f32[8,64], index: 2, kind: output, shape index: {}]  }
   0x1   :  { %v12_v0 = vld [vmem:[%s96_s1] sm:$0xff] }
   0x2   :  { %v13_v1 = vld [vmem:[%s95_s0] sm:$0xff] }
   0x3   :  { %7 = vsyncpa [#allocation3], 0  ;;  %v14_v2 = vadd.f32 %v13_v1, %v12_v0  ;;  %s69_s13 = smov 32   ;;  %s70_s14 = smov [#allocation2]   ;;  %vm23_vm1 = vcmask 523520  }
   0x4   :  { %19 = vrot.lane.b32.xlu0 %v12_v0, %s69_s13  ;;  %s30_s15 = sshll.u32 %s70_s14, 4  ;;  %s32_s18 = sshll.u32 %s97_s2, 4  ;;  %s31_s15 = int_to_ptr.vmem [resolvable:$true] %s30_s15  ;;  %s33_s18 = int_to_ptr.hbm [resolvable:$true] %s32_s18 }
   0x5   :  { %16 = vst.msk [vmem:[#allocation2] sm:$0xff] %vm15_vm0, %v14_v2 }
  0x76   :  { %v20_v3 = vpop.permute.xlu0 %19 }
  0x77   :  { %v22_v4 = vadd.f32 %v20_v3, %v13_v1 }
  0x79   :  { %24 = vst.msk [vmem:[#allocation2] sm:$0xff] %vm23_vm1, %v22_v4 }
  0x7a   :  { %35 = dma.vmem_to_hbm [thread:$0]  %s31_s15, 128, %s33_s18, [#allocation3]  }
  0x7b   :  { %67 = dma.done.wait [#allocation3], 128  }
  0x7c   :  { %68 = vsyncadd [#allocation3], 4294967168 }
  0x7d   :  { %40 = vsyncpa [#allocation3], 1 }

</bundles_post_ra>
